<compile_context>
chip_gen: v7x
topology: tpu7x:2x2x1
jax: 0.10.0
libtpu: 0.0.40
codegen_flags: <defaults>
</compile_context>

<pallas_src>
import math

import jax
import jax.numpy as jnp
from jax import lax
from jax.experimental import pallas as pl
from jax.experimental.pallas import tpu as pltpu

MODEL_DIM = 512
NUM_HEADS = 8
HEAD_DIM = MODEL_DIM // NUM_HEADS            # 64
ATTN_SCALE = 1.0 / math.sqrt(MODEL_DIM / NUM_HEADS)   # = 0.125 (exact power of two)
NEG_INF = -1000000000.0                      # same constant as masked_fill_ in the spec
# DROPOUT = 0.2 is declared in the PyTorch module but never used in forward().

_VMEM_LIMIT = 32 * 1024 * 1024               # explicit scoped-VMEM budget (fits v5e..v7x)


# --------------------------------------------------------------------------- #
# Projection kernel: y = x @ W.T as a row-tiled, full-width (512-deep) GEMM.
# --------------------------------------------------------------------------- #
def _linear_kernel(x_ref, wt_ref, o_ref):
    # x_ref: (tr, D_in), wt_ref: (D_in, D_out) = W.T, o_ref: (tr, D_out)
    o_ref[...] = jnp.dot(x_ref[...], wt_ref[...],
                         preferred_element_type=jnp.float32).astype(o_ref.dtype)


def _pick_row_tile(rows, max_tile=256):
    if rows <= max_tile:
        return rows
    for t in (256, 128, 64, 32, 16, 8):
        if rows % t == 0:
            return t
    return rows  # TODO(synk): pad ragged row counts instead of falling back to one block


def _linear(x2d, w_t, tile_rows):
    rows, d_in = x2d.shape
    d_out = w_t.shape[1]
    return pl.pallas_call(
        _linear_kernel,
        out_shape=jax.ShapeDtypeStruct((rows, d_out), x2d.dtype),
        grid_spec=pltpu.PrefetchScalarGridSpec(
            num_scalar_prefetch=0,
            grid=(rows // tile_rows,),
            in_specs=[
                pl.BlockSpec((tile_rows, d_in), lambda i: (i, 0)),
                pl.BlockSpec((d_in, d_out), lambda i: (0, 0)),     # VMEM-resident W.T
            ],
            out_specs=pl.BlockSpec((tile_rows, d_out), lambda i: (i, 0)),
        ),
        compiler_params=pltpu.CompilerParams(
            dimension_semantics=("parallel",),
            vmem_limit_bytes=_VMEM_LIMIT),
    )(x2d, w_t)


# --------------------------------------------------------------------------- #
# Flash-style attention + fused output projection.
# grid = (B, n_q_tiles, n_kv_tiles); online softmax state lives in VMEM scratch.
# --------------------------------------------------------------------------- #
def _flash_kernel(q_ref, k_ref, v_ref, mask_ref, wo_ref, o_ref,
                  m_ref, l_ref, acc_ref):
    # q_ref: (tq, D)   projected Q tile (already scaled by 1/sqrt(dk) via Wq.T)
    # k_ref/v_ref: (tk, D) projected K/V tiles
    # mask_ref: (tq, tk) int8 0/1
    # wo_ref: (D, D) = Wo.T (VMEM-resident)
    # o_ref: (tq, D)
    # scratch: m_ref/l_ref: (H, tq, 1) f32 running max / running sum
    #          acc_ref: (tq, D) f32, head h occupies lanes [h*64, (h+1)*64)
    ki = pl.program_id(2)
    n_k = pl.num_programs(2)

    @pl.when(ki == 0)
    def _():
        m_ref[...] = jnp.full_like(m_ref, -jnp.inf)
        l_ref[...] = jnp.zeros_like(l_ref)
        acc_ref[...] = jnp.zeros_like(acc_ref)

    # int8 mask -> f32 once per (q-tile, kv-tile) step; shared across all heads.
    masked = mask_ref[...].astype(jnp.float32) == 0.0          # (tq, tk) bool

    # Static 8-way unroll over heads; per-head live values are only (tq, tk)/(tq, 64)
    # tiles, so live ranges stay bounded by the tile size.
    for h in range(NUM_HEADS):
        sl = slice(h * HEAD_DIM, (h + 1) * HEAD_DIM)
        q_h = q_ref[:, sl]                                      # (tq, dk)
        k_h = k_ref[:, sl]                                      # (tk, dk)
        v_h = v_ref[:, sl]                                      # (tk, dk)

        # scores = Q_h @ K_h.T (contract dk of both; no explicit transpose)
        s = lax.dot_general(q_h, k_h, (((1,), (1,)), ((), ())),
                            preferred_element_type=jnp.float32)  # (tq, tk)
        s = jnp.where(masked, NEG_INF, s)

        m_prev = m_ref[h]                                        # (tq, 1)
        m_new = jnp.maximum(m_prev, jnp.max(s, axis=-1, keepdims=True))
        alpha = jnp.exp(m_prev - m_new)
        p = jnp.exp(s - m_new)                                   # (tq, tk)

        l_ref[h] = alpha * l_ref[h] + jnp.sum(p, axis=-1, keepdims=True)
        acc_ref[:, sl] = alpha * acc_ref[:, sl] + jnp.dot(
            p, v_h, preferred_element_type=jnp.float32)
        m_ref[h] = m_new

    @pl.when(ki == n_k - 1)
    def _():
        # Normalize each head's lane slab, then one wide (tq,512)@(512,512) output
        # projection (full MXU depth) on the lane-dense accumulator.
        for h in range(NUM_HEADS):
            sl = slice(h * HEAD_DIM, (h + 1) * HEAD_DIM)
            acc_ref[:, sl] = acc_ref[:, sl] * pl.reciprocal(l_ref[h], approx=False)
        o_ref[...] = jnp.dot(acc_ref[...], wo_ref[...],
                             preferred_element_type=jnp.float32).astype(o_ref.dtype)


def _pick_q_tile(s, max_tile=128):
    if s <= max_tile:
        return s
    for t in (128, 96, 64, 32):
        if s % t == 0:
            return t
    return s  # TODO(synk): pad ragged query lengths instead of a full-S block


def _pick_kv_tile(s, max_tile=128):
    if s <= max_tile:
        return s
    if s % max_tile == 0:
        return max_tile
    return s  # TODO(synk): pad ragged kv lengths to a multiple of 128 instead


def multi_head_attention_forward(q, k, v, mask, wq, wk, wv, wo):
    """q: (B, Sq, 512); k, v: (B, Skv, 512); mask: broadcastable to (B, 1, Sq, Skv)
    or None; wq/wk/wv/wo: (512, 512) in PyTorch Linear layout (out, in)."""
    b, s_q, d = q.shape
    _, s_kv, _ = k.shape
    assert d == MODEL_DIM and v.shape == k.shape

    # Host-side layout plumbing (one-time): PyTorch Linear is y = x @ W.T.
    # Fold the 1/sqrt(dk) = 2^-3 attention scale into Wq.T (exact, power of two).
    wq_t = wq.T * ATTN_SCALE
    wk_t = wk.T
    wv_t = wv.T
    wo_t = wo.T

    # ---- Q/K/V projections: full-width GEMMs over flattened (B*S) rows ----
    q_p = _linear(q.reshape(b * s_q, d), wq_t, _pick_row_tile(b * s_q)).reshape(b, s_q, d)
    k_p = _linear(k.reshape(b * s_kv, d), wk_t, _pick_row_tile(b * s_kv)).reshape(b, s_kv, d)
    v_p = _linear(v.reshape(b * s_kv, d), wv_t, _pick_row_tile(b * s_kv)).reshape(b, s_kv, d)

    # ---- mask as int8 (4x smaller HBM->VMEM stream than int32) ----
    if mask is None:
        mask8 = jnp.ones((b, 1, s_q, s_kv), jnp.int8)
    else:
        mask8 = jnp.broadcast_to(mask, (b, 1, s_q, s_kv)).astype(jnp.int8)

    tq = _pick_q_tile(s_q)
    tk = _pick_kv_tile(s_kv)
    grid = (b, s_q // tq, s_kv // tk)

    return pl.pallas_call(
        _flash_kernel,
        out_shape=jax.ShapeDtypeStruct((b, s_q, d), q.dtype),
        grid_spec=pltpu.PrefetchScalarGridSpec(
            num_scalar_prefetch=0,
            grid=grid,
            in_specs=[
                pl.BlockSpec((None, tq, d), lambda bi, qi, ki: (bi, qi, 0)),          # Q
                pl.BlockSpec((None, tk, d), lambda bi, qi, ki: (bi, ki, 0)),          # K
                pl.BlockSpec((None, tk, d), lambda bi, qi, ki: (bi, ki, 0)),          # V
                pl.BlockSpec((None, None, tq, tk),
                             lambda bi, qi, ki: (bi, 0, qi, ki)),                     # mask
                pl.BlockSpec((d, d), lambda bi, qi, ki: (0, 0)),                      # Wo.T
            ],
            out_specs=pl.BlockSpec((None, tq, d), lambda bi, qi, ki: (bi, qi, 0)),
            scratch_shapes=[
                pltpu.VMEM((NUM_HEADS, tq, 1), jnp.float32),        # running max m
                pltpu.VMEM((NUM_HEADS, tq, 1), jnp.float32),        # running sum l
                pltpu.VMEM((tq, MODEL_DIM), jnp.float32),           # running ctx (head-major lanes)
            ],
        ),
        compiler_params=pltpu.CompilerParams(
            dimension_semantics=("parallel", "parallel", "arbitrary"),
            vmem_limit_bytes=_VMEM_LIMIT),
    )(q_p, k_p, v_p, mask8, wo_t)


# --------------------------------------------------------------------------- #
# Pure-JAX reference (mirror of the PyTorch forward()).
# --------------------------------------------------------------------------- #
def _reference_mha(q, k, v, mask, wq, wk, wv, wo):
    b, s, d = q.shape
    Q = (q @ wq.T).reshape(b, s, NUM_HEADS, HEAD_DIM).transpose(0, 2, 1, 3)
    K = (k @ wk.T).reshape(b, -1, NUM_HEADS, HEAD_DIM).transpose(0, 2, 1, 3)
    V = (v @ wv.T).reshape(b, -1, NUM_HEADS, HEAD_DIM).transpose(0, 2, 1, 3)
    scores = (Q @ K.transpose(0, 1, 3, 2)) * ATTN_SCALE           # (B, H, Sq, Skv)
    scores = jnp.where(mask == 0, NEG_INF, scores)
    probs = jax.nn.softmax(scores, axis=-1)
    ctx = (probs @ V).transpose(0, 2, 1, 3).reshape(b, s, d)
    return ctx @ wo.T


if __name__ == "__main__":
    batch, seq = 2, 8

    key = jax.random.PRNGKey(0)
    kq, kk, kv_, kwq, kwk, kwv, kwo = jax.random.split(key, 7)
    w_scale = 1.0 / math.sqrt(MODEL_DIM)

    q = jax.random.normal(kq, (batch, seq, MODEL_DIM), jnp.float32)
    k = jax.random.normal(kk, (batch, seq, MODEL_DIM), jnp.float32)
    v = jax.random.normal(kv_, (batch, seq, MODEL_DIM), jnp.float32)
    wq = jax.random.normal(kwq, (MODEL_DIM, MODEL_DIM), jnp.float32) * w_scale
    wk = jax.random.normal(kwk, (MODEL_DIM, MODEL_DIM), jnp.float32) * w_scale
    wv = jax.random.normal(kwv, (MODEL_DIM, MODEL_DIM), jnp.float32) * w_scale
    wo = jax.random.normal(kwo, (MODEL_DIM, MODEL_DIM), jnp.float32) * w_scale

    # causal 0/1 mask broadcast to (B, 1, S, S) like a typical decoder mask
    causal = jnp.tril(jnp.ones((seq, seq), jnp.int32))
    mask = jnp.broadcast_to(causal[None, None], (batch, 1, seq, seq))

    out = jax.block_until_ready(
        multi_head_attention_forward(q, k, v, mask, wq, wk, wv, wo))

    # Reference at full f32 matmul precision (scoped to the reference only).
    with jax.default_matmul_precision("highest"):
        ref = jax.block_until_ready(_reference_mha(q, k, v, mask, wq, wk, wv, wo))

    assert out.shape == (batch, seq, MODEL_DIM)
    err = float(jnp.max(jnp.abs(out - ref)))
    # Tolerance revisited explicitly (per the perf review): in-kernel matmuls now run at
    # DEFAULT MXU precision (single-pass bf16 with f32 accumulation); the expected max
    # abs error vs the f32 reference at these shapes is ~1e-2, so check against 3e-2.
    assert jnp.allclose(out, ref, atol=3e-2, rtol=3e-2), err

    print("KERNEL_OK")
</pallas_src>

<mosaic_0001>
module attributes {stable_mosaic.version = 11 : i64} {
  func.func @_linear_kernel(%arg0: i32, %arg1: memref<16x512xf32, #tpu.memory_space<vmem>>, %arg2: memref<512x512xf32, #tpu.memory_space<vmem>>, %arg3: memref<16x512xf32, #tpu.memory_space<vmem>>) attributes {dimension_semantics = [#tpu.dimension_semantics<parallel>], iteration_bounds = array<i64: 1>, scalar_prefetch = 0 : i64, scratch_operands = 0 : i64, tpu.core_type = #tpu.core_type<tc>, window_params = [{transform_indices = @transform_0, window_bounds = array<i64: 16, 512>}, {pipeline_mode = #tpu.pipeline_mode<synchronous>, transform_indices = @transform_1, window_bounds = array<i64: 512, 512>}, {transform_indices = @transform_2, window_bounds = array<i64: 16, 512>}]} {
    %c0 = arith.constant 0 : index
    %c0_0 = arith.constant 0 : index
    %0 = vector.load %arg1[%c0, %c0_0] : memref<16x512xf32, #tpu.memory_space<vmem>>, vector<16x512xf32>
    %c0_1 = arith.constant 0 : index
    %c0_2 = arith.constant 0 : index
    %1 = vector.load %arg2[%c0_1, %c0_2] : memref<512x512xf32, #tpu.memory_space<vmem>>, vector<512x512xf32>
    %cst = arith.constant dense<0.000000e+00> : vector<16x512xf32>
    %2 = tpu.matmul %0, %1, %cst {dimension_numbers = #tpu.dot_dimension_numbers<[1], [0], [0], [1], [0, 0, 1, 1], [], []>} : vector<16x512xf32>, vector<512x512xf32>, vector<16x512xf32> -> vector<16x512xf32>
    %c0_3 = arith.constant 0 : index
    %c0_4 = arith.constant 0 : index
    %3 = vector.load %arg3[%c0_3, %c0_4] : memref<16x512xf32, #tpu.memory_space<vmem>>, vector<16x512xf32>
    tpu.vector_store %arg3[%c0_3, %c0_4], %2 {strides = array<i32>} : memref<16x512xf32, #tpu.memory_space<vmem>>, vector<16x512xf32>,
    return
  }
  func.func @transform_0(%arg0: i32) -> (i32, i32) {
    %c0_i32 = arith.constant 0 : i32
    %c0_i32_0 = arith.constant 0 : i32
    return %arg0, %c0_i32 : i32, i32
  }
  func.func @transform_1(%arg0: i32) -> (i32, i32) {
    %c0_i32 = arith.constant 0 : i32
    %c0_i32_0 = arith.constant 0 : i32
    %c0_i32_1 = arith.constant 0 : i32
    return %c0_i32, %c0_i32_0 : i32, i32
  }
  func.func @transform_2(%arg0: i32) -> (i32, i32) {
    %c0_i32 = arith.constant 0 : i32
    %c0_i32_0 = arith.constant 0 : i32
    return %arg0, %c0_i32 : i32, i32
  }
}

</mosaic_0001>

<bundles_post_ra>
// kernel: tpu_custom_call.1
= control target key start
LH: loop header
LB: loop body
LE: loop exit
PB: predicated region body
PF: predicated region fallthrough
CT: control target
= control target key end

     0   :  { %7 = vsyncpa [#allocation3], 0  ;;  %s1044_s0 = inlined_call_operand.hbm [shape: f32[16,512], index: 0, kind: input, shape index: {}]   ;;  %s1045_s1 = inlined_call_operand.hbm [shape: f32[512,512], index: 1, kind: input, shape index: {}]   ;;  %s1046_s2 = inlined_call_operand.hbm [shape: f32[16,512], index: 2, kind: output, shape index: {}]  }
   0x1   :  { %8 = vsyncpa [#allocation6], 0 }
   0x2   :  { %9 = vsyncpa [#allocation4], 0  ;;  %s979_s9 = smov [#allocation2]   ;;  %s907_s13 = scalar_lea.hbm %s1044_s0, 1024 }
   0x3   :  { %s15_s10 = sshll.u32 %s979_s9, 4  ;;  %p908_p0 = scmp.ne.s32.totalorder %s1044_s0, %s907_s13  ;;  %s16_s10 = int_to_ptr.vmem [resolvable:$true] %s15_s10 }
   0x4   :  { %p911_p1 = scmp.lt.u32.totalorder %s907_s13, %s1044_s0 }
   0x6   :  { %p913_p2 = pnand %p911_p1, %p908_p0 }
   0x8   :  { %916 = shalt.err (!%p913_p2)
}
   0x9   :  { %s917_s18 = scalar_lea.vmem %s16_s10, 1024  ;;  %p922_p4 = scmp.lt.s32.totalorder %s16_s10, %s16_s10 }
   0xa   :  { %p918_p3 = scmp.ne.s32.totalorder %s16_s10, %s917_s18  ;;  %p923_p5 = scmp.lt.s32.totalorder %s917_s18, %s917_s18 }
   0xc   :  { %p924_p6 = por %p923_p5, %p922_p4 }
   0xe   :  { %p925_p7 = pnand %p924_p6, %p918_p3 }
  0x10   :  { %928 = shalt.err (!%p925_p7)
}
  0x11   :  { %s980_s19 = smov 512   ;;  %s981_s20 = smov 32  }
  0x12   :  { %21 = dma.hbm_to_vmem [thread:$0]  %s1044_s0, 1024, %s16_s10, [#allocation3], %s980_s19, %s980_s19, %s981_s20  }
  0x13   :  { %s982_s23 = smov [#allocation5]   ;;  %s929_s27 = scalar_lea.hbm %s1045_s1, 32768 }
  0x14   :  { %s27_s24 = sshll.u32 %s982_s23, 4  ;;  %p930_p8 = scmp.ne.s32.totalorder %s1045_s1, %s929_s27  ;;  %s28_s24 = int_to_ptr.vmem [resolvable:$true] %s27_s24 }
  0x15   :  { %p933_p9 = scmp.lt.u32.totalorder %s929_s27, %s1045_s1 }
  0x17   :  { %p935_p10 = pnand %p933_p9, %p930_p8 }
  0x19   :  { %938 = shalt.err (!%p935_p10)
}
  0x1a   :  { %s939_s4 = scalar_lea.vmem %s28_s24, 32768  ;;  %p944_p12 = scmp.lt.s32.totalorder %s28_s24, %s28_s24 }
  0x1b   :  { %p940_p11 = scmp.ne.s32.totalorder %s28_s24, %s939_s4  ;;  %p945_p13 = scmp.lt.s32.totalorder %s939_s4, %s939_s4 }
  0x1d   :  { %p946_p0 = por %p945_p13, %p944_p12 }
  0x1f   :  { %p947_p1 = pnand %p946_p0, %p940_p11 }
  0x21   :  { %950 = shalt.err (!%p947_p1)
}
  0x22   :  { %33 = dma.hbm_to_vmem [thread:$0]  %s1045_s1, 32768, %s28_s24, [#allocation6], %s980_s19, %s980_s19, %s981_s20  }
  0x23   :  { %973 = dma.done.wait [#allocation3], 1024  }
  0x24   :  { %974 = vsyncadd [#allocation3], 4294966272 }
  0x25   :  { %975 = dma.done.wait [#allocation6], 32768  }
  0x26   :  { %976 = vsyncadd [#allocation6], 4294934528  ;;  %v49_v0 = vld [vmem:[#allocation5 + $0x8] sm:$0xff]  ;;  %v51_v2 = vld [vmem:[#allocation5 + $0x18] sm:$0xff]  ;;  %s983_s1 = smov [#allocation7]  }
  0x27   :  { %v53_v1 = vld [vmem:[#allocation5 + $0x28] sm:$0xff]  ;;  %v55_v4 = vld [vmem:[#allocation5 + $0x38] sm:$0xff]  ;;  %v48_v5 = vld [vmem:[#allocation5] sm:$0xff]  ;;  %s625_s6 = sshll.u32 %s983_s1, 4  ;;  %s626_s6 = int_to_ptr.vmem [resolvable:$true] %s625_s6 }
  0x28   :  { %v638_v3 = vpack.c.bf16 %v53_v1, %v49_v0  ;;  %v52_v6 = vld [vmem:[#allocation5 + $0x20] sm:$0xff]  ;;  %v766_v7 = vpack.c.bf16 %v55_v4, %v51_v2  ;;  %v50_v9 = vld [vmem:[#allocation5 + $0x10] sm:$0xff]  ;;  %v57_v11 = vld [vmem:[#allocation5 + $0x48] sm:$0xff]  ;;  %s951_s7 = scalar_lea.vmem %s626_s6, 1024  ;;  %p956_p3 = scmp.lt.s32.totalorder %s626_s6, %s626_s6 }
  0x29   :  { %v640_v8 = vpack.c.bf16 %v52_v6, %v48_v5  ;;  %v54_v10 = vld [vmem:[#allocation5 + $0x30] sm:$0xff]  ;;  %v61_v13 = vld [vmem:[#allocation5 + $0x68] sm:$0xff]  ;;  %v59_v14 = vld [vmem:[#allocation5 + $0x58] sm:$0xff]  ;;  %p952_p2 = scmp.ne.s32.totalorder %s626_s6, %s951_s7  ;;  %p957_p4 = scmp.lt.s32.totalorder %s951_s7, %s951_s7 }
  0x2a   :  { %639 = vmatprep.subr.bf16.mxu0 %v638_v3  ;;  %v768_v12 = vpack.c.bf16 %v54_v10, %v50_v9  ;;  %v63_v15 = vld [vmem:[#allocation5 + $0x78] sm:$0xff]  ;;  %767 = vmatprep.subr.bf16.mxu1 %v766_v7  ;;  %v642_v16 = vpack.c.bf16 %v61_v13, %v57_v11  ;;  %v56_v18 = vld [vmem:[#allocation5 + $0x40] sm:$0xff]  ;;  %v58_v20 = vld [vmem:[#allocation5 + $0x50] sm:$0xff] }
  0x2b   :  { %641 = vmatpush1.bf16.msra.mxu0 %v640_v8  ;;  %v770_v17 = vpack.c.bf16 %v63_v15, %v59_v14  ;;  %v60_v19 = vld [vmem:[#allocation5 + $0x60] sm:$0xff]  ;;  %v62_v22 = vld [vmem:[#allocation5 + $0x70] sm:$0xff]  ;;  %v65_v23 = vld [vmem:[#allocation5 + $0x88] sm:$0xff]  ;;  %p958_p5 = por %p957_p4, %p956_p3 }
  0x2c   :  { %769 = vmatpush1.bf16.msra.mxu1 %v768_v12  ;;  %v644_v21 = vpack.c.bf16 %v60_v19, %v56_v18  ;;  %v69_v24 = vld [vmem:[#allocation5 + $0xa8] sm:$0xff]  ;;  %643 = vmatprep.subr.bf16.mxu0 %v642_v16  ;;  %v772_v25 = vpack.c.bf16 %v62_v22, %v58_v20  ;;  %v67_v27 = vld [vmem:[#allocation5 + $0x98] sm:$0xff]  ;;  %v64_v29 = vld [vmem:[#allocation5 + $0x80] sm:$0xff] }
  0x2d   :  { %771 = vmatprep.subr.bf16.mxu1 %v770_v17  ;;  %v646_v26 = vpack.c.bf16 %v69_v24, %v65_v23  ;;  %v71_v28 = vld [vmem:[#allocation5 + $0xb8] sm:$0xff]  ;;  %v68_v31 = vld [vmem:[#allocation5 + $0xa0] sm:$0xff]  ;;  %v66_v32 = vld [vmem:[#allocation5 + $0x90] sm:$0xff]  ;;  %p959_p6 = pnand %p958_p5, %p952_p2 }
  0x2e   :  { %v774_v30 = vpack.c.bf16 %v71_v28, %v67_v27  ;;  %v70_v33 = vld [vmem:[#allocation5 + $0xb0] sm:$0xff]  ;;  %v648_v34 = vpack.c.bf16 %v68_v31, %v64_v29  ;;  %v73_v35 = vld [vmem:[#allocation5 + $0xc8] sm:$0xff]  ;;  %v75_v37 = vld [vmem:[#allocation5 + $0xd8] sm:$0xff] }
  0x2f   :  { %645 = vmatpush1.bf16.msra.mxu0 %v644_v21  ;;  %v77_v36 = vld [vmem:[#allocation5 + $0xe8] sm:$0xff]  ;;  %v776_v38 = vpack.c.bf16 %v70_v33, %v66_v32  ;;  %v79_v40 = vld [vmem:[#allocation5 + $0xf8] sm:$0xff]  ;;  %v72_v41 = vld [vmem:[#allocation5 + $0xc0] sm:$0xff] }
  0x30   :  { %773 = vmatpush1.bf16.msra.mxu1 %v772_v25  ;;  %647 = vmatprep.subr.bf16.mxu0 %v646_v26  ;;  %v650_v39 = vpack.c.bf16 %v77_v36, %v73_v35  ;;  %v76_v42 = vld [vmem:[#allocation5 + $0xe0] sm:$0xff]  ;;  %v778_v43 = vpack.c.bf16 %v79_v40, %v75_v37  ;;  %v74_v44 = vld [vmem:[#allocation5 + $0xd0] sm:$0xff]  ;;  %v81_v46 = vld [vmem:[#allocation5 + $0x108] sm:$0xff] }
  0x31   :  { %775 = vmatprep.subr.bf16.mxu1 %v774_v30  ;;  %v78_v45 = vld [vmem:[#allocation5 + $0xf0] sm:$0xff]  ;;  %v85_v47 = vld [vmem:[#allocation5 + $0x128] sm:$0xff]  ;;  %v83_v48 = vld [vmem:[#allocation5 + $0x118] sm:$0xff]  ;;  %v652_v50 = vpack.c.bf16 %v76_v42, %v72_v41 }
  0x32   :  { %v87_v49 = vld [vmem:[#allocation5 + $0x138] sm:$0xff]  ;;  %v780_v51 = vpack.c.bf16 %v78_v45, %v74_v44  ;;  %v654_v52 = vpack.c.bf16 %v85_v47, %v81_v46  ;;  %v80_v53 = vld [vmem:[#allocation5 + $0x100] sm:$0xff]  ;;  %v82_v55 = vld [vmem:[#allocation5 + $0x110] sm:$0xff] }
  0x33   :  { %649 = vmatpush1.bf16.msra.mxu0 %v648_v34  ;;  %v84_v54 = vld [vmem:[#allocation5 + $0x120] sm:$0xff]  ;;  %v782_v56 = vpack.c.bf16 %v87_v49, %v83_v48  ;;  %v86_v57 = vld [vmem:[#allocation5 + $0x130] sm:$0xff]  ;;  %v89_v58 = vld [vmem:[#allocation5 + $0x148] sm:$0xff] }
  0x34   :  { %777 = vmatpush1.bf16.msra.mxu1 %v776_v38  ;;  %651 = vmatprep.subr.bf16.mxu0 %v650_v39  ;;  %v93_v59 = vld [vmem:[#allocation5 + $0x168] sm:$0xff]  ;;  %v91_v60 = vld [vmem:[#allocation5 + $0x158] sm:$0xff]  ;;  %v656_v62 = vpack.c.bf16 %v84_v54, %v80_v53  ;;  %v784_v63 = vpack.c.bf16 %v86_v57, %v82_v55  ;;  %v88_v1 = vld [vmem:[#allocation5 + $0x140] sm:$0xff] }
  0x35   :  { %779 = vmatprep.subr.bf16.mxu1 %v778_v43  ;;  %v95_v61 = vld [vmem:[#allocation5 + $0x178] sm:$0xff]  ;;  %v658_v0 = vpack.c.bf16 %v93_v59, %v89_v58  ;;  %v92_v2 = vld [vmem:[#allocation5 + $0x160] sm:$0xff]  ;;  %v90_v3 = vld [vmem:[#allocation5 + $0x150] sm:$0xff] }
  0x36   :  { %v786_v4 = vpack.c.bf16 %v95_v61, %v91_v60  ;;  %v94_v5 = vld [vmem:[#allocation5 + $0x170] sm:$0xff]  ;;  %v97_v6 = vld [vmem:[#allocation5 + $0x188] sm:$0xff]  ;;  %v99_v8 = vld [vmem:[#allocation5 + $0x198] sm:$0xff]  ;;  %v660_v10 = vpack.c.bf16 %v92_v2, %v88_v1 }
  0x37   :  { %653 = vmatpush1.bf16.msra.mxu0 %v652_v50  ;;  %v101_v7 = vld [vmem:[#allocation5 + $0x1a8] sm:$0xff]  ;;  %v103_v9 = vld [vmem:[#allocation5 + $0x1b8] sm:$0xff]  ;;  %v788_v11 = vpack.c.bf16 %v94_v5, %v90_v3  ;;  %v96_v13 = vld [vmem:[#allocation5 + $0x180] sm:$0xff] }
  0x38   :  { %781 = vmatpush1.bf16.msra.mxu1 %v780_v51  ;;  %655 = vmatprep.subr.bf16.mxu0 %v654_v52  ;;  %v662_v12 = vpack.c.bf16 %v101_v7, %v97_v6  ;;  %v100_v14 = vld [vmem:[#allocation5 + $0x1a0] sm:$0xff]  ;;  %v98_v15 = vld [vmem:[#allocation5 + $0x190] sm:$0xff]  ;;  %v790_v16 = vpack.c.bf16 %v103_v9, %v99_v8  ;;  %v105_v18 = vld [vmem:[#allocation5 + $0x1c8] sm:$0xff] }
  0x39   :  { %783 = vmatprep.subr.bf16.mxu1 %v782_v56  ;;  %v102_v17 = vld [vmem:[#allocation5 + $0x1b0] sm:$0xff]  ;;  %v109_v19 = vld [vmem:[#allocation5 + $0x1e8] sm:$0xff]  ;;  %v107_v20 = vld [vmem:[#allocation5 + $0x1d8] sm:$0xff]  ;;  %v664_v22 = vpack.c.bf16 %v100_v14, %v96_v13 }
  0x3a   :  { %v111_v21 = vld [vmem:[#allocation5 + $0x1f8] sm:$0xff]  ;;  %v792_v23 = vpack.c.bf16 %v102_v17, %v98_v15  ;;  %v666_v24 = vpack.c.bf16 %v109_v19, %v105_v18  ;;  %v104_v25 = vld [vmem:[#allocation5 + $0x1c0] sm:$0xff]  ;;  %v106_v27 = vld [vmem:[#allocation5 + $0x1d0] sm:$0xff] }
  0x3b   :  { %657 = vmatpush1.bf16.msra.mxu0 %v656_v62  ;;  %v108_v26 = vld [vmem:[#allocation5 + $0x1e0] sm:$0xff]  ;;  %v794_v28 = vpack.c.bf16 %v111_v21, %v107_v20  ;;  %v110_v29 = vld [vmem:[#allocation5 + $0x1f0] sm:$0xff]  ;;  %v113_v30 = vld [vmem:[#allocation5 + $0x208] sm:$0xff] }
  0x3c   :  { %785 = vmatpush1.bf16.msra.mxu1 %v784_v63  ;;  %659 = vmatprep.subr.bf16.mxu0 %v658_v0  ;;  %v117_v31 = vld [vmem:[#allocation5 + $0x228] sm:$0xff]  ;;  %v115_v32 = vld [vmem:[#allocation5 + $0x218] sm:$0xff]  ;;  %v668_v34 = vpack.c.bf16 %v108_v26, %v104_v25  ;;  %v796_v35 = vpack.c.bf16 %v110_v29, %v106_v27  ;;  %v112_v37 = vld [vmem:[#allocation5 + $0x200] sm:$0xff] }
  0x3d   :  { %787 = vmatprep.subr.bf16.mxu1 %v786_v4  ;;  %v119_v33 = vld [vmem:[#allocation5 + $0x238] sm:$0xff]  ;;  %v670_v36 = vpack.c.bf16 %v117_v31, %v113_v30  ;;  %v116_v38 = vld [vmem:[#allocation5 + $0x220] sm:$0xff]  ;;  %v114_v39 = vld [vmem:[#allocation5 + $0x210] sm:$0xff] }
  0x3e   :  { %v798_v40 = vpack.c.bf16 %v119_v33, %v115_v32  ;;  %v118_v41 = vld [vmem:[#allocation5 + $0x230] sm:$0xff]  ;;  %v121_v42 = vld [vmem:[#allocation5 + $0x248] sm:$0xff]  ;;  %v123_v44 = vld [vmem:[#allocation5 + $0x258] sm:$0xff]  ;;  %v672_v46 = vpack.c.bf16 %v116_v38, %v112_v37 }
  0x3f   :  { %661 = vmatpush1.bf16.msra.mxu0 %v660_v10  ;;  %v125_v43 = vld [vmem:[#allocation5 + $0x268] sm:$0xff]  ;;  %v127_v45 = vld [vmem:[#allocation5 + $0x278] sm:$0xff]  ;;  %v800_v47 = vpack.c.bf16 %v118_v41, %v114_v39  ;;  %v120_v49 = vld [vmem:[#allocation5 + $0x240] sm:$0xff] }
  0x40   :  { %789 = vmatpush1.bf16.msra.mxu1 %v788_v11  ;;  %663 = vmatprep.subr.bf16.mxu0 %v662_v12  ;;  %v674_v48 = vpack.c.bf16 %v125_v43, %v121_v42  ;;  %v124_v50 = vld [vmem:[#allocation5 + $0x260] sm:$0xff]  ;;  %v122_v51 = vld [vmem:[#allocation5 + $0x250] sm:$0xff]  ;;  %v802_v52 = vpack.c.bf16 %v127_v45, %v123_v44  ;;  %v129_v54 = vld [vmem:[#allocation5 + $0x288] sm:$0xff] }
  0x41   :  { %791 = vmatprep.subr.bf16.mxu1 %v790_v16  ;;  %v126_v53 = vld [vmem:[#allocation5 + $0x270] sm:$0xff]  ;;  %v133_v55 = vld [vmem:[#allocation5 + $0x2a8] sm:$0xff]  ;;  %v131_v56 = vld [vmem:[#allocation5 + $0x298] sm:$0xff]  ;;  %v676_v58 = vpack.c.bf16 %v124_v50, %v120_v49 }
  0x42   :  { %v135_v57 = vld [vmem:[#allocation5 + $0x2b8] sm:$0xff]  ;;  %v804_v59 = vpack.c.bf16 %v126_v53, %v122_v51  ;;  %v678_v60 = vpack.c.bf16 %v133_v55, %v129_v54  ;;  %v128_v61 = vld [vmem:[#allocation5 + $0x280] sm:$0xff]  ;;  %v130_v63 = vld [vmem:[#allocation5 + $0x290] sm:$0xff] }
  0x43   :  { %665 = vmatpush1.bf16.msra.mxu0 %v664_v22  ;;  %v132_v62 = vld [vmem:[#allocation5 + $0x2a0] sm:$0xff]  ;;  %v806_v0 = vpack.c.bf16 %v135_v57, %v131_v56  ;;  %v134_v1 = vld [vmem:[#allocation5 + $0x2b0] sm:$0xff]  ;;  %v137_v2 = vld [vmem:[#allocation5 + $0x2c8] sm:$0xff] }
  0x44   :  { %793 = vmatpush1.bf16.msra.mxu1 %v792_v23  ;;  %667 = vmatprep.subr.bf16.mxu0 %v666_v24  ;;  %v141_v3 = vld [vmem:[#allocation5 + $0x2e8] sm:$0xff]  ;;  %v139_v4 = vld [vmem:[#allocation5 + $0x2d8] sm:$0xff]  ;;  %v680_v6 = vpack.c.bf16 %v132_v62, %v128_v61  ;;  %v136_v7 = vld [vmem:[#allocation5 + $0x2c0] sm:$0xff]  ;;  %v808_v8 = vpack.c.bf16 %v134_v1, %v130_v63 }
  0x45   :  { %795 = vmatprep.subr.bf16.mxu1 %v794_v28  ;;  %v143_v5 = vld [vmem:[#allocation5 + $0x2f8] sm:$0xff]  ;;  %v682_v9 = vpack.c.bf16 %v141_v3, %v137_v2  ;;  %v140_v10 = vld [vmem:[#allocation5 + $0x2e0] sm:$0xff]  ;;  %v138_v11 = vld [vmem:[#allocation5 + $0x2d0] sm:$0xff] }
  0x46   :  { %v142_v12 = vld [vmem:[#allocation5 + $0x2f0] sm:$0xff]  ;;  %v810_v13 = vpack.c.bf16 %v143_v5, %v139_v4  ;;  %v145_v14 = vld [vmem:[#allocation5 + $0x308] sm:$0xff]  ;;  %v147_v17 = vld [vmem:[#allocation5 + $0x318] sm:$0xff]  ;;  %v684_v19 = vpack.c.bf16 %v140_v10, %v136_v7 }
  0x47   :  { %669 = vmatpush1.bf16.msra.mxu0 %v668_v34  ;;  %v149_v15 = vld [vmem:[#allocation5 + $0x328] sm:$0xff]  ;;  %v151_v18 = vld [vmem:[#allocation5 + $0x338] sm:$0xff]  ;;  %v812_v20 = vpack.c.bf16 %v142_v12, %v138_v11  ;;  %v144_v22 = vld [vmem:[#allocation5 + $0x300] sm:$0xff] }
  0x48   :  { %797 = vmatpush1.bf16.msra.mxu1 %v796_v35  ;;  %671 = vmatprep.subr.bf16.mxu0 %v670_v36  ;;  %v41_v16 = vld [vmem:[#allocation2 + $0x8] sm:$0xff]  ;;  %v686_v21 = vpack.c.bf16 %v149_v15, %v145_v14  ;;  %v148_v23 = vld [vmem:[#allocation5 + $0x320] sm:$0xff]  ;;  %v146_v24 = vld [vmem:[#allocation5 + $0x310] sm:$0xff]  ;;  %v814_v25 = vpack.c.bf16 %v151_v18, %v147_v17 }
  0x49   :  { %799 = vmatprep.subr.bf16.mxu1 %v798_v40  ;;  %368 = vmatprep.mubr.f32.mxu0 %v41_v16  ;;  %v150_v26 = vld [vmem:[#allocation5 + $0x330] sm:$0xff]  ;;  %v153_v27 = vld [vmem:[#allocation5 + $0x348] sm:$0xff]  ;;  %v155_v29 = vld [vmem:[#allocation5 + $0x358] sm:$0xff]  ;;  %v688_v31 = vpack.c.bf16 %v148_v23, %v144_v22 }
  0x4a   :  { %522 = vmatprep.mubr.f32.mxu1 %v41_v16  ;;  %v157_v28 = vld [vmem:[#allocation5 + $0x368] sm:$0xff]  ;;  %v159_v30 = vld [vmem:[#allocation5 + $0x378] sm:$0xff]  ;;  %v816_v32 = vpack.c.bf16 %v150_v26, %v146_v24  ;;  %v152_v34 = vld [vmem:[#allocation5 + $0x340] sm:$0xff] }
  0x4b   :  { %673 = vmatpush1.bf16.msra.mxu0 %v672_v46  ;;  %v690_v33 = vpack.c.bf16 %v157_v28, %v153_v27  ;;  %v156_v35 = vld [vmem:[#allocation5 + $0x360] sm:$0xff]  ;;  %v154_v36 = vld [vmem:[#allocation5 + $0x350] sm:$0xff]  ;;  %v818_v37 = vpack.c.bf16 %v159_v30, %v155_v29  ;;  %v161_v39 = vld [vmem:[#allocation5 + $0x388] sm:$0xff] }
  0x4c   :  { %801 = vmatpush1.bf16.msra.mxu1 %v800_v47  ;;  %675 = vmatprep.subr.bf16.mxu0 %v674_v48  ;;  %v158_v38 = vld [vmem:[#allocation5 + $0x370] sm:$0xff]  ;;  %v165_v40 = vld [vmem:[#allocation5 + $0x3a8] sm:$0xff]  ;;  %v163_v41 = vld [vmem:[#allocation5 + $0x398] sm:$0xff]  ;;  %v692_v43 = vpack.c.bf16 %v156_v35, %v152_v34 }
  0x4d   :  { %803 = vmatprep.subr.bf16.mxu1 %v802_v52  ;;  %v167_v42 = vld [vmem:[#allocation5 + $0x3b8] sm:$0xff]  ;;  %v820_v44 = vpack.c.bf16 %v158_v38, %v154_v36  ;;  %v694_v45 = vpack.c.bf16 %v165_v40, %v161_v39  ;;  %v160_v46 = vld [vmem:[#allocation5 + $0x380] sm:$0xff]  ;;  %v162_v48 = vld [vmem:[#allocation5 + $0x390] sm:$0xff] }
  0x4e   :  { %v164_v47 = vld [vmem:[#allocation5 + $0x3a0] sm:$0xff]  ;;  %v822_v49 = vpack.c.bf16 %v167_v42, %v163_v41  ;;  %v166_v50 = vld [vmem:[#allocation5 + $0x3b0] sm:$0xff]  ;;  %v169_v51 = vld [vmem:[#allocation5 + $0x3c8] sm:$0xff] }
  0x4f   :  { %677 = vmatpush1.bf16.msra.mxu0 %v676_v58  ;;  %v173_v52 = vld [vmem:[#allocation5 + $0x3e8] sm:$0xff]  ;;  %v171_v53 = vld [vmem:[#allocation5 + $0x3d8] sm:$0xff]  ;;  %v696_v55 = vpack.c.bf16 %v164_v47, %v160_v46  ;;  %v824_v56 = vpack.c.bf16 %v166_v50, %v162_v48  ;;  %v168_v58 = vld [vmem:[#allocation5 + $0x3c0] sm:$0xff] }
  0x50   :  { %805 = vmatpush1.bf16.msra.mxu1 %v804_v59  ;;  %679 = vmatprep.subr.bf16.mxu0 %v678_v60  ;;  %v175_v54 = vld [vmem:[#allocation5 + $0x3f8] sm:$0xff]  ;;  %v698_v57 = vpack.c.bf16 %v173_v52, %v169_v51  ;;  %v172_v59 = vld [vmem:[#allocation5 + $0x3e0] sm:$0xff]  ;;  %v170_v60 = vld [vmem:[#allocation5 + $0x3d0] sm:$0xff] }
  0x51   :  { %807 = vmatprep.subr.bf16.mxu1 %v806_v0  ;;  %v826_v61 = vpack.c.bf16 %v175_v54, %v171_v53  ;;  %v174_v62 = vld [vmem:[#allocation5 + $0x3f0] sm:$0xff]  ;;  %v177_v63 = vld [vmem:[#allocation5 + $0x408] sm:$0xff]  ;;  %v179_v1 = vld [vmem:[#allocation5 + $0x418] sm:$0xff]  ;;  %v700_v3 = vpack.c.bf16 %v172_v59, %v168_v58 }
  0x52   :  { %v181_v0 = vld [vmem:[#allocation5 + $0x428] sm:$0xff]  ;;  %v183_v2 = vld [vmem:[#allocation5 + $0x438] sm:$0xff]  ;;  %v828_v4 = vpack.c.bf16 %v174_v62, %v170_v60  ;;  %v180_v7 = vld [vmem:[#allocation5 + $0x420] sm:$0xff] }
  0x53   :  { %681 = vmatpush1.bf16.msra.mxu0 %v680_v6  ;;  %v702_v5 = vpack.c.bf16 %v181_v0, %v177_v63  ;;  %v176_v6 = vld [vmem:[#allocation5 + $0x400] sm:$0xff]  ;;  %v182_v10 = vld [vmem:[#allocation5 + $0x430] sm:$0xff]  ;;  %v185_v11 = vld [vmem:[#allocation5 + $0x448] sm:$0xff] }
  0x54   :  { %809 = vmatpush1.bf16.msra.mxu1 %v808_v8  ;;  %683 = vmatprep.subr.bf16.mxu0 %v682_v9  ;;  %v178_v8 = vld [vmem:[#allocation5 + $0x410] sm:$0xff]  ;;  %v830_v9 = vpack.c.bf16 %v183_v2, %v179_v1  ;;  %v189_v12 = vld [vmem:[#allocation5 + $0x468] sm:$0xff]  ;;  %v191_v14 = vld [vmem:[#allocation5 + $0x478] sm:$0xff]  ;;  %v704_v16 = vpack.c.bf16 %v180_v7, %v176_v6 }
  0x55   :  { %811 = vmatprep.subr.bf16.mxu1 %v810_v13  ;;  %v187_v13 = vld [vmem:[#allocation5 + $0x458] sm:$0xff]  ;;  %v40_v15 = vld [vmem:[#allocation2] sm:$0xff]  ;;  %v832_v17 = vpack.c.bf16 %v182_v10, %v178_v8  ;;  %v706_v18 = vpack.c.bf16 %v189_v12, %v185_v11  ;;  %v190_v23 = vld [vmem:[#allocation5 + $0x470] sm:$0xff] }
  0x56   :  { %v834_v22 = vpack.c.bf16 %v191_v14, %v187_v13  ;;  %v193_v24 = vld [vmem:[#allocation5 + $0x488] sm:$0xff]  ;;  %v195_v26 = vld [vmem:[#allocation5 + $0x498] sm:$0xff]  ;;  %v198_v35 = vld [vmem:[#allocation5 + $0x4b0] sm:$0xff] }
  0x57   :  { %685 = vmatpush1.bf16.msra.mxu0 %v684_v19  ;;  %v184_v19 = vld [vmem:[#allocation5 + $0x440] sm:$0xff]  ;;  %v199_v27 = vld [vmem:[#allocation5 + $0x4b8] sm:$0xff]  ;;  %v201_v36 = vld [vmem:[#allocation5 + $0x4c8] sm:$0xff] }
  0x58   :  { %813 = vmatpush1.bf16.msra.mxu1 %v812_v20  ;;  %687 = vmatprep.subr.bf16.mxu0 %v686_v21  ;;  %v188_v20 = vld [vmem:[#allocation5 + $0x460] sm:$0xff]  ;;  %v186_v21 = vld [vmem:[#allocation5 + $0x450] sm:$0xff]  ;;  %v838_v34 = vpack.c.bf16 %v199_v27, %v195_v26  ;;  %v203_v38 = vld [vmem:[#allocation5 + $0x4d8] sm:$0xff] }
  0x59   :  { %815 = vmatprep.subr.bf16.mxu1 %v814_v25  ;;  %v197_v25 = vld [vmem:[#allocation5 + $0x4a8] sm:$0xff]  ;;  %v708_v28 = vpack.c.bf16 %v188_v20, %v184_v19  ;;  %v836_v29 = vpack.c.bf16 %v190_v23, %v186_v21  ;;  %v207_v39 = vld [vmem:[#allocation5 + $0x4f8] sm:$0xff]  ;;  %v206_v47 = vld [vmem:[#allocation5 + $0x4f0] sm:$0xff] }
  0x5a   :  { %v710_v30 = vpack.c.bf16 %v197_v25, %v193_v24  ;;  %v842_v46 = vpack.c.bf16 %v207_v39, %v203_v38  ;;  %v209_v48 = vld [vmem:[#allocation5 + $0x508] sm:$0xff]  ;;  %v211_v50 = vld [vmem:[#allocation5 + $0x518] sm:$0xff]  ;;  %v214_v59 = vld [vmem:[#allocation5 + $0x530] sm:$0xff] }
  0x5b   :  { %689 = vmatpush1.bf16.msra.mxu0 %v688_v31  ;;  %v192_v31 = vld [vmem:[#allocation5 + $0x480] sm:$0xff]  ;;  %v215_v51 = vld [vmem:[#allocation5 + $0x538] sm:$0xff]  ;;  %v217_v60 = vld [vmem:[#allocation5 + $0x548] sm:$0xff] }
  0x5c   :  { %817 = vmatpush1.bf16.msra.mxu1 %v816_v32  ;;  %691 = vmatprep.subr.bf16.mxu0 %v690_v33  ;;  %v196_v32 = vld [vmem:[#allocation5 + $0x4a0] sm:$0xff]  ;;  %v194_v33 = vld [vmem:[#allocation5 + $0x490] sm:$0xff]  ;;  %v846_v58 = vpack.c.bf16 %v215_v51, %v211_v50  ;;  %v219_v62 = vld [vmem:[#allocation5 + $0x558] sm:$0xff] }
  0x5d   :  { %819 = vmatprep.subr.bf16.mxu1 %v818_v37  ;;  %v205_v37 = vld [vmem:[#allocation5 + $0x4e8] sm:$0xff]  ;;  %v712_v40 = vpack.c.bf16 %v196_v32, %v192_v31  ;;  %v840_v41 = vpack.c.bf16 %v198_v35, %v194_v33  ;;  %v223_v63 = vld [vmem:[#allocation5 + $0x578] sm:$0xff]  ;;  %v222_v7 = vld [vmem:[#allocation5 + $0x570] sm:$0xff] }
  0x5e   :  { %v714_v42 = vpack.c.bf16 %v205_v37, %v201_v36  ;;  %v850_v6 = vpack.c.bf16 %v223_v63, %v219_v62  ;;  %v225_v8 = vld [vmem:[#allocation5 + $0x588] sm:$0xff]  ;;  %v227_v10 = vld [vmem:[#allocation5 + $0x598] sm:$0xff]  ;;  %v224_v14 = vld [vmem:[#allocation5 + $0x580] sm:$0xff] }
  0x5f   :  { %693 = vmatpush1.bf16.msra.mxu0 %v692_v43  ;;  %v200_v43 = vld [vmem:[#allocation5 + $0x4c0] sm:$0xff]  ;;  %v231_v11 = vld [vmem:[#allocation5 + $0x5b8] sm:$0xff]  ;;  %v45_v12 = vld [vmem:[#allocation2 + $0x28] sm:$0xff] }
  0x60   :  { %821 = vmatpush1.bf16.msra.mxu1 %v820_v44  ;;  %695 = vmatprep.subr.bf16.mxu0 %v694_v45  ;;  %v204_v44 = vld [vmem:[#allocation5 + $0x4e0] sm:$0xff]  ;;  %v202_v45 = vld [vmem:[#allocation5 + $0x4d0] sm:$0xff]  ;;  %v854_v21 = vpack.c.bf16 %v231_v11, %v227_v10  ;;  %v237_v23 = vld [vmem:[#allocation5 + $0x5e8] sm:$0xff] }
  0x61   :  { %823 = vmatprep.subr.bf16.mxu1 %v822_v49  ;;  %v213_v49 = vld [vmem:[#allocation5 + $0x528] sm:$0xff]  ;;  %v716_v52 = vpack.c.bf16 %v204_v44, %v200_v43  ;;  %v844_v53 = vpack.c.bf16 %v206_v47, %v202_v45  ;;  %v226_v19 = vld [vmem:[#allocation5 + $0x590] sm:$0xff]  ;;  %v43_v24 = vld [vmem:[#allocation2 + $0x18] sm:$0xff] }
  0x62   :  { %v718_v54 = vpack.c.bf16 %v213_v49, %v209_v48  ;;  %v230_v20 = vld [vmem:[#allocation5 + $0x5b0] sm:$0xff]  ;;  %v235_v25 = vld [vmem:[#allocation5 + $0x5d8] sm:$0xff]  ;;  %v236_v31 = vld [vmem:[#allocation5 + $0x5e0] sm:$0xff] }
  0x63   :  { %697 = vmatpush1.bf16.msra.mxu0 %v696_v55  ;;  %v208_v55 = vld [vmem:[#allocation5 + $0x500] sm:$0xff]  ;;  %v239_v26 = vld [vmem:[#allocation5 + $0x5f8] sm:$0xff]  ;;  %v234_v32 = vld [vmem:[#allocation5 + $0x5d0] sm:$0xff] }
  0x64   :  { %825 = vmatpush1.bf16.msra.mxu1 %v824_v56  ;;  %699 = vmatprep.subr.bf16.mxu0 %v698_v57  ;;  %v212_v56 = vld [vmem:[#allocation5 + $0x520] sm:$0xff]  ;;  %v210_v57 = vld [vmem:[#allocation5 + $0x510] sm:$0xff]  ;;  %v858_v33 = vpack.c.bf16 %v239_v26, %v235_v25  ;;  %v241_v35 = vld [vmem:[#allocation5 + $0x608] sm:$0xff] }
  0x65   :  { %827 = vmatprep.subr.bf16.mxu1 %v826_v61  ;;  %v221_v61 = vld [vmem:[#allocation5 + $0x568] sm:$0xff]  ;;  %v720_v0 = vpack.c.bf16 %v212_v56, %v208_v55  ;;  %v848_v1 = vpack.c.bf16 %v214_v59, %v210_v57  ;;  %v243_v37 = vld [vmem:[#allocation5 + $0x618] sm:$0xff]  ;;  %v244_v43 = vld [vmem:[#allocation5 + $0x620] sm:$0xff] }
  0x66   :  { %v722_v2 = vpack.c.bf16 %v221_v61, %v217_v60  ;;  %v245_v36 = vld [vmem:[#allocation5 + $0x628] sm:$0xff]  ;;  %v247_v38 = vld [vmem:[#allocation5 + $0x638] sm:$0xff]  ;;  %v242_v44 = vld [vmem:[#allocation5 + $0x610] sm:$0xff] }
  0x67   :  { %701 = vmatpush1.bf16.msra.mxu0 %v700_v3  ;;  %v216_v3 = vld [vmem:[#allocation5 + $0x540] sm:$0xff]  ;;  %v862_v45 = vpack.c.bf16 %v247_v38, %v243_v37  ;;  %v249_v47 = vld [vmem:[#allocation5 + $0x648] sm:$0xff]  ;;  %v251_v49 = vld [vmem:[#allocation5 + $0x658] sm:$0xff] }
  0x68   :  { %829 = vmatpush1.bf16.msra.mxu1 %v828_v4  ;;  %703 = vmatprep.subr.bf16.mxu0 %v702_v5  ;;  %v220_v4 = vld [vmem:[#allocation5 + $0x560] sm:$0xff]  ;;  %v218_v5 = vld [vmem:[#allocation5 + $0x550] sm:$0xff]  ;;  %v253_v48 = vld [vmem:[#allocation5 + $0x668] sm:$0xff] }
  0x69   :  { %831 = vmatprep.subr.bf16.mxu1 %v830_v9  ;;  %v229_v9 = vld [vmem:[#allocation5 + $0x5a8] sm:$0xff]  ;;  %v724_v13 = vpack.c.bf16 %v220_v4, %v216_v3  ;;  %v255_v50 = vld [vmem:[#allocation5 + $0x678] sm:$0xff]  ;;  %v252_v55 = vld [vmem:[#allocation5 + $0x660] sm:$0xff] }
  0x6a   :  { %369 = vmatmul.mubr.f32.vlgmr.msra.gmra.mrb[0].mxu0 %v40_v15  ;;  %v250_v56 = vld [vmem:[#allocation5 + $0x650] sm:$0xff]  ;;  %v866_v57 = vpack.c.bf16 %v255_v50, %v251_v49  ;;  %v257_v59 = vld [vmem:[#allocation5 + $0x688] sm:$0xff]  ;;  %v259_v61 = vld [vmem:[#allocation5 + $0x698] sm:$0xff] }
  0x6b   :  { %705 = vmatpush1.bf16.msra.mxu0 %v704_v16  ;;  %523 = vmatmul.mubr.f32.vlgmr.msra.gmra.mrb[0].mxu1 %v40_v15  ;;  %v44_v15 = vld [vmem:[#allocation2 + $0x20] sm:$0xff]  ;;  %v852_v16 = vpack.c.bf16 %v222_v7, %v218_v5  ;;  %v261_v60 = vld [vmem:[#allocation5 + $0x6a8] sm:$0xff]  ;;  %v263_v62 = vld [vmem:[#allocation5 + $0x6b8] sm:$0xff] }
  0x6c   :  { %833 = vmatpush1.bf16.msra.mxu1 %v832_v17  ;;  %707 = vmatprep.subr.bf16.mxu0 %v706_v18  ;;  %v726_v17 = vpack.c.bf16 %v229_v9, %v225_v8  ;;  %v228_v18 = vld [vmem:[#allocation5 + $0x5a0] sm:$0xff]  ;;  %v258_v4 = vld [vmem:[#allocation5 + $0x690] sm:$0xff]  ;;  %v870_v5 = vpack.c.bf16 %v263_v62, %v259_v61  ;;  %v265_v7 = vld [vmem:[#allocation5 + $0x6c8] sm:$0xff] }
  0x6d   :  { %835 = vmatprep.subr.bf16.mxu1 %v834_v22  ;;  %374 = vmatprep.mubr.f32.mxu0 %v45_v12  ;;  %v233_v22 = vld [vmem:[#allocation5 + $0x5c8] sm:$0xff]  ;;  %v728_v27 = vpack.c.bf16 %v228_v18, %v224_v14  ;;  %v260_v3 = vld [vmem:[#allocation5 + $0x6a0] sm:$0xff]  ;;  %v267_v9 = vld [vmem:[#allocation5 + $0x6d8] sm:$0xff] }
  0x6e   :  { %528 = vmatprep.mubr.f32.mxu1 %v45_v12  ;;  %375 = vmatmul.mubr.f32.gmra.mrb[2].mxu0 %v44_v15  ;;  %v269_v8 = vld [vmem:[#allocation5 + $0x6e8] sm:$0xff]  ;;  %v271_v10 = vld [vmem:[#allocation5 + $0x6f8] sm:$0xff]  ;;  %v264_v14 = vld [vmem:[#allocation5 + $0x6c0] sm:$0xff] }
  0x6f   :  { %709 = vmatpush1.bf16.msra.mxu0 %v708_v28  ;;  %529 = vmatmul.mubr.f32.gmra.mrb[2].mxu1 %v44_v15  ;;  %v856_v28 = vpack.c.bf16 %v230_v20, %v226_v19  ;;  %v268_v15 = vld [vmem:[#allocation5 + $0x6e0] sm:$0xff]  ;;  %v270_v18 = vld [vmem:[#allocation5 + $0x6f0] sm:$0xff]  ;;  %v273_v19 = vld [vmem:[#allocation5 + $0x708] sm:$0xff] }
  0x70   :  { %837 = vmatpush1.bf16.msra.mxu1 %v836_v29  ;;  %711 = vmatprep.subr.bf16.mxu0 %v710_v30  ;;  %v730_v29 = vpack.c.bf16 %v237_v23, %v233_v22  ;;  %v232_v30 = vld [vmem:[#allocation5 + $0x5c0] sm:$0xff]  ;;  %v277_v20 = vld [vmem:[#allocation5 + $0x728] sm:$0xff]  ;;  %v279_v22 = vld [vmem:[#allocation5 + $0x738] sm:$0xff]  ;;  %v748_v23 = vpack.c.bf16 %v268_v15, %v264_v14 }
  0x71   :  { %839 = vmatprep.subr.bf16.mxu1 %v838_v34  ;;  %445 = vmatprep.mubr.f32.mxu0 %v43_v24  ;;  %v238_v34 = vld [vmem:[#allocation5 + $0x5f0] sm:$0xff]  ;;  %v732_v39 = vpack.c.bf16 %v236_v31, %v232_v30  ;;  %v750_v25 = vpack.c.bf16 %v277_v20, %v273_v19  ;;  %v272_v26 = vld [vmem:[#allocation5 + $0x700] sm:$0xff]  ;;  %v281_v31 = vld [vmem:[#allocation5 + $0x748] sm:$0xff] }
  0x72   :  { %599 = vmatprep.mubr.f32.mxu1 %v43_v24  ;;  %v278_v30 = vld [vmem:[#allocation5 + $0x730] sm:$0xff]  ;;  %v280_v38 = vld [vmem:[#allocation5 + $0x740] sm:$0xff] }
  0x73   :  { %713 = vmatpush1.bf16.msra.mxu0 %v712_v40  ;;  %v860_v40 = vpack.c.bf16 %v238_v34, %v234_v32  ;;  %v285_v32 = vld [vmem:[#allocation5 + $0x768] sm:$0xff]  ;;  %v287_v34 = vld [vmem:[#allocation5 + $0x778] sm:$0xff]  ;;  %v288_v50 = vld [vmem:[#allocation5 + $0x780] sm:$0xff] }
  0x74   :  { %841 = vmatpush1.bf16.msra.mxu1 %v840_v41  ;;  %715 = vmatprep.subr.bf16.mxu0 %v714_v42  ;;  %v734_v41 = vpack.c.bf16 %v245_v36, %v241_v35  ;;  %v240_v42 = vld [vmem:[#allocation5 + $0x600] sm:$0xff]  ;;  %v754_v37 = vpack.c.bf16 %v285_v32, %v281_v31 }
  0x75   :  { %843 = vmatprep.subr.bf16.mxu1 %v842_v46  ;;  %v246_v46 = vld [vmem:[#allocation5 + $0x630] sm:$0xff]  ;;  %v736_v51 = vpack.c.bf16 %v244_v43, %v240_v42  ;;  %v289_v43 = vld [vmem:[#allocation5 + $0x788] sm:$0xff]  ;;  %v296_v62 = vld [vmem:[#allocation5 + $0x7c0] sm:$0xff] }
  0x76   :  { %v286_v42 = vld [vmem:[#allocation5 + $0x770] sm:$0xff] }
  0x77   :  { %717 = vmatpush1.bf16.msra.mxu0 %v716_v52  ;;  %v864_v52 = vpack.c.bf16 %v246_v46, %v242_v44  ;;  %v293_v44 = vld [vmem:[#allocation5 + $0x7a8] sm:$0xff]  ;;  %v295_v46 = vld [vmem:[#allocation5 + $0x7b8] sm:$0xff] }
  0x78   :  { %845 = vmatpush1.bf16.msra.mxu1 %v844_v53  ;;  %719 = vmatprep.subr.bf16.mxu0 %v718_v54  ;;  %v738_v53 = vpack.c.bf16 %v253_v48, %v249_v47  ;;  %v248_v54 = vld [vmem:[#allocation5 + $0x640] sm:$0xff]  ;;  %v758_v49 = vpack.c.bf16 %v293_v44, %v289_v43 }
  0x79   :  { %847 = vmatprep.subr.bf16.mxu1 %v846_v58  ;;  %v254_v58 = vld [vmem:[#allocation5 + $0x670] sm:$0xff]  ;;  %v740_v63 = vpack.c.bf16 %v252_v55, %v248_v54  ;;  %v297_v55 = vld [vmem:[#allocation5 + $0x7c8] sm:$0xff] }
  0x7a   :  { %v294_v54 = vld [vmem:[#allocation5 + $0x7b0] sm:$0xff] }
  0x7b   :  { %721 = vmatpush1.bf16.msra.mxu0 %v720_v0  ;;  %v868_v0 = vpack.c.bf16 %v254_v58, %v250_v56  ;;  %v301_v56 = vld [vmem:[#allocation5 + $0x7e8] sm:$0xff]  ;;  %v303_v58 = vld [vmem:[#allocation5 + $0x7f8] sm:$0xff] }
  0x7c   :  { %849 = vmatpush1.bf16.msra.mxu1 %v848_v1  ;;  %723 = vmatprep.subr.bf16.mxu0 %v722_v2  ;;  %v742_v1 = vpack.c.bf16 %v261_v60, %v257_v59  ;;  %v256_v2 = vld [vmem:[#allocation5 + $0x680] sm:$0xff]  ;;  %v762_v61 = vpack.c.bf16 %v301_v56, %v297_v55 }
  0x7d   :  { %851 = vmatprep.subr.bf16.mxu1 %v850_v6  ;;  %v262_v6 = vld [vmem:[#allocation5 + $0x6b0] sm:$0xff]  ;;  %v744_v11 = vpack.c.bf16 %v260_v3, %v256_v2 }
  0x7e   :  { %v872_v12 = vpack.c.bf16 %v262_v6, %v258_v4  ;;  %v302_v2 = vld [vmem:[#allocation5 + $0x7f0] sm:$0xff]  ;;  %v47_v6 = vld [vmem:[#allocation2 + $0x38] sm:$0xff] }
  0x7f   :  { %725 = vmatpush1.bf16.msra.mxu0 %v724_v13  ;;  %v746_v13 = vpack.c.bf16 %v269_v8, %v265_v7  ;;  %v46_v7 = vld [vmem:[#allocation2 + $0x30] sm:$0xff] }
  0x80   :  { %853 = vmatpush1.bf16.msra.mxu1 %v852_v16  ;;  %727 = vmatprep.subr.bf16.mxu0 %v726_v17  ;;  %v266_v16 = vld [vmem:[#allocation5 + $0x6d0] sm:$0xff]  ;;  %v874_v17 = vpack.c.bf16 %v271_v10, %v267_v9 }
  0x81   :  { %855 = vmatprep.subr.bf16.mxu1 %v854_v21  ;;  %v275_v21 = vld [vmem:[#allocation5 + $0x718] sm:$0xff]  ;;  %v876_v24 = vpack.c.bf16 %v270_v18, %v266_v16 }
  0x83   :  { %729 = vmatpush1.bf16.msra.mxu0 %v728_v27  ;;  %v276_v27 = vld [vmem:[#allocation5 + $0x720] sm:$0xff] }
  0x84   :  { %857 = vmatpush1.bf16.msra.mxu1 %v856_v28  ;;  %731 = vmatprep.subr.bf16.mxu0 %v730_v29  ;;  %v274_v28 = vld [vmem:[#allocation5 + $0x710] sm:$0xff]  ;;  %v878_v29 = vpack.c.bf16 %v279_v22, %v275_v21  ;;  %v752_v35 = vpack.c.bf16 %v276_v27, %v272_v26 }
  0x85   :  { %859 = vmatprep.subr.bf16.mxu1 %v858_v33  ;;  %v283_v33 = vld [vmem:[#allocation5 + $0x758] sm:$0xff]  ;;  %v880_v36 = vpack.c.bf16 %v278_v30, %v274_v28 }
  0x87   :  { %733 = vmatpush1.bf16.msra.mxu0 %v732_v39  ;;  %v284_v39 = vld [vmem:[#allocation5 + $0x760] sm:$0xff] }
  0x88   :  { %861 = vmatpush1.bf16.msra.mxu1 %v860_v40  ;;  %735 = vmatprep.subr.bf16.mxu0 %v734_v41  ;;  %v282_v40 = vld [vmem:[#allocation5 + $0x750] sm:$0xff]  ;;  %v882_v41 = vpack.c.bf16 %v287_v34, %v283_v33  ;;  %v756_v47 = vpack.c.bf16 %v284_v39, %v280_v38 }
  0x89   :  { %863 = vmatprep.subr.bf16.mxu1 %v862_v45  ;;  %v291_v45 = vld [vmem:[#allocation5 + $0x798] sm:$0xff]  ;;  %v884_v48 = vpack.c.bf16 %v286_v42, %v282_v40 }
  0x8b   :  { %737 = vmatpush1.bf16.msra.mxu0 %v736_v51  ;;  %v292_v51 = vld [vmem:[#allocation5 + $0x7a0] sm:$0xff] }
  0x8c   :  { %865 = vmatpush1.bf16.msra.mxu1 %v864_v52  ;;  %739 = vmatprep.subr.bf16.mxu0 %v738_v53  ;;  %v290_v52 = vld [vmem:[#allocation5 + $0x790] sm:$0xff]  ;;  %v886_v53 = vpack.c.bf16 %v295_v46, %v291_v45  ;;  %v760_v59 = vpack.c.bf16 %v292_v51, %v288_v50 }
  0x8d   :  { %867 = vmatprep.subr.bf16.mxu1 %v866_v57  ;;  %v299_v57 = vld [vmem:[#allocation5 + $0x7d8] sm:$0xff]  ;;  %v888_v60 = vpack.c.bf16 %v294_v54, %v290_v52 }
  0x8f   :  { %741 = vmatpush1.bf16.msra.mxu0 %v740_v63  ;;  %v300_v63 = vld [vmem:[#allocation5 + $0x7e0] sm:$0xff] }
  0x90   :  { %869 = vmatpush1.bf16.msra.mxu1 %v868_v0  ;;  %743 = vmatprep.subr.bf16.mxu0 %v742_v1  ;;  %v890_v0 = vpack.c.bf16 %v303_v58, %v299_v57  ;;  %v298_v1 = vld [vmem:[#allocation5 + $0x7d0] sm:$0xff]  ;;  %v764_v3 = vpack.c.bf16 %v300_v63, %v296_v62 }
  0x91   :  { %871 = vmatprep.subr.bf16.mxu1 %v870_v5  ;;  %v892_v4 = vpack.c.bf16 %v302_v2, %v298_v1  ;;  %v42_v5 = vld [vmem:[#allocation2 + $0x10] sm:$0xff] }
  0x93   :  { %745 = vmatpush1.bf16.msra.mxu0 %v744_v11 }
  0x94   :  { %873 = vmatpush1.bf16.msra.mxu1 %v872_v12  ;;  %747 = vmatprep.subr.bf16.mxu0 %v746_v13 }
  0x95   :  { %875 = vmatprep.subr.bf16.mxu1 %v874_v17 }
  0x97   :  { %749 = vmatpush1.bf16.msra.mxu0 %v748_v23 }
  0x98   :  { %877 = vmatpush1.bf16.msra.mxu1 %v876_v24  ;;  %751 = vmatprep.subr.bf16.mxu0 %v750_v25 }
  0x99   :  { %879 = vmatprep.subr.bf16.mxu1 %v878_v29 }
  0x9b   :  { %753 = vmatpush1.bf16.msra.mxu0 %v752_v35 }
  0x9c   :  { %881 = vmatpush1.bf16.msra.mxu1 %v880_v36  ;;  %755 = vmatprep.subr.bf16.mxu0 %v754_v37 }
  0x9d   :  { %883 = vmatprep.subr.bf16.mxu1 %v882_v41 }
  0x9f   :  { %757 = vmatpush1.bf16.msra.mxu0 %v756_v47 }
  0xa0   :  { %885 = vmatpush1.bf16.msra.mxu1 %v884_v48  ;;  %759 = vmatprep.subr.bf16.mxu0 %v758_v49 }
  0xa1   :  { %887 = vmatprep.subr.bf16.mxu1 %v886_v53 }
  0xa3   :  { %761 = vmatpush1.bf16.msra.mxu0 %v760_v59 }
  0xa4   :  { %889 = vmatpush1.bf16.msra.mxu1 %v888_v60  ;;  %763 = vmatprep.subr.bf16.mxu0 %v762_v61 }
  0xa5   :  { %891 = vmatprep.subr.bf16.mxu1 %v890_v0 }
  0xa7   :  { %765 = vmatpush1.bf16.msra.mxu0 %v764_v3 }
  0xa8   :  { %893 = vmatpush1.bf16.msra.mxu1 %v892_v4 }
  0xaa   :  { %446 = vmatmul.mubr.f32.vlgmr.msra.gmra.mrb[0].mxu0 %v42_v5 }
  0xab   :  { %600 = vmatmul.mubr.f32.vlgmr.msra.gmra.mrb[0].mxu1 %v42_v5  ;;  %451 = vmatprep.mubr.f32.mxu0 %v47_v6 }
  0xac   :  { %605 = vmatprep.mubr.f32.mxu1 %v47_v6 }
  0xae   :  { %452 = vmatmul.mubr.f32.gmra.mrb[2].mxu0 %v46_v7 }
  0xaf   :  { %606 = vmatmul.mubr.f32.gmra.mrb[2].mxu1 %v46_v7 }
 0x17d   :  { %v447_v8 = vpop.f32.mrb[0].mxu0 }
 0x17e   :  { %612 = vst [vmem:[#allocation7] sm:$0xff] %v447_v8  ;;  %v601_v9 = vpop.f32.mrb[0].mxu1  ;;  %v449_v10 = vpop.f32.mrb[1].mxu0 }
 0x17f   :  { %614 = vst [vmem:[#allocation7 + $0x10] sm:$0xff] %v601_v9  ;;  %613 = vst [vmem:[#allocation7 + $0x8] sm:$0xff] %v449_v10  ;;  %v603_v11 = vpop.f32.mrb[1].mxu1 }
 0x180   :  { %615 = vst [vmem:[#allocation7 + $0x18] sm:$0xff] %v603_v11 }
 0x181   :  { %v453_v12 = vpop.f32.mrb[2].mxu0 }
 0x182   :  { %616 = vst [vmem:[#allocation7 + $0x20] sm:$0xff] %v453_v12  ;;  %v607_v13 = vpop.f32.mrb[2].mxu1  ;;  %v455_v14 = vpop.f32.mrb[3].mxu0 }
 0x183   :  { %618 = vst [vmem:[#allocation7 + $0x30] sm:$0xff] %v607_v13  ;;  %617 = vst [vmem:[#allocation7 + $0x28] sm:$0xff] %v455_v14  ;;  %v609_v15 = vpop.f32.mrb[3].mxu1 }
 0x184   :  { %619 = vst [vmem:[#allocation7 + $0x38] sm:$0xff] %v609_v15 }
 0x185   :  { %962 = shalt.err (!%p959_p6)
}
 0x186   :  { %s963_s10 = scalar_lea.hbm %s1046_s2, 1024 }
 0x187   :  { %p964_p7 = scmp.ne.s32.totalorder %s1046_s2, %s963_s10  ;;  %p967_p8 = scmp.lt.u32.totalorder %s963_s10, %s1046_s2 }
 0x189   :  { %p969_p9 = pnand %p967_p8, %p964_p7 }
 0x18b   :  { %972 = shalt.err (!%p969_p9)
}
 0x18c   :  { %631 = dma.vmem_to_hbm [thread:$0]  %s626_s6, 1024, %s1046_s2, [#allocation4], %s980_s19, %s980_s19, %s981_s20  }
 0x18d   :  { %977 = dma.done.wait [#allocation4], 1024  }
 0x18e   :  { %978 = vsyncadd [#allocation4], 4294966272 }
 0x18f   :  { %635 = vsyncpa [#allocation3], 1 }
 0x190   :  { %636 = vsyncpa [#allocation6], 1 }
 0x191   :  { %637 = vsyncpa [#allocation4], 1 }

</bundles_post_ra>
